<compile_context>
chip_gen: v6e
topology: v6e:2x2x1
jax: 0.10.0
libtpu: 0.0.40
codegen_flags: <defaults>
</compile_context>

<pallas_src>
import math

import jax
import jax.numpy as jnp
from jax.experimental import pallas as pl
from jax.experimental.pallas import tpu as pltpu


# Tile caps (bf16-friendly). Worst-case kernel footprint with these caps is
# ~12-18 MiB (double-buffered inputs/outputs + f32 accumulator), comfortably
# under v7x's 64 MiB physical VMEM and v5e/v6e's 128 MiB.
_TM_MAX = 512
_TN_MAX = 1024
_TK_MAX = 1024
_VMEM_BUDGET = 26 * 1024 * 1024  # target for kernel-owned VMEM


def _round_up(x: int, m: int) -> int:
    return (x + m - 1) // m * m


def _cdiv(a: int, b: int) -> int:
    return (a + b - 1) // b


def _pick_tile(dim: int, cap: int, unit: int) -> int:
    """Multiple-of-`unit` tile (<= cap) that minimizes padding overshoot."""
    r = _round_up(dim, unit)
    if r <= cap:
        return r
    nblocks = _cdiv(dim, cap)
    return _round_up(_cdiv(dim, nblocks), unit)


def _vmem_bytes(tm, tn, tk, in_itemsize, out_itemsize, has_bias):
    x_b = 2 * tm * tk * in_itemsize      # double-buffered activation tile
    w_b = 2 * tk * tn * in_itemsize      # double-buffered weight tile
    o_b = 2 * tm * tn * out_itemsize     # double-buffered output tile
    acc = tm * tn * 4                    # f32 accumulator scratch
    b_b = 2 * tn * 4 if has_bias else 0  # double-buffered bias row
    return x_b + w_b + o_b + acc + b_b


def _linear_bias_kernel(x_ref, w_ref, b_ref, o_ref, acc_ref):
    """One (tm, tn) output tile, accumulated over the K grid axis.

    x_ref: (tm, tk)  activation tile
    w_ref: (tk, tn)  pre-transposed weight tile (K, N layout)
    b_ref: (1, tn)   f32 bias tile
    o_ref: (tm, tn)  output tile
    acc_ref: (tm, tn) f32 accumulator (persists over the K axis)
    """
    k = pl.program_id(2)

    @pl.when(k == 0)
    def _():
        # Fold the bias into the accumulator init (no separate epilogue add).
        acc_ref[...] = jnp.broadcast_to(b_ref[...], acc_ref.shape)

    acc_ref[...] += jnp.dot(x_ref[...], w_ref[...],
                            preferred_element_type=jnp.float32)

    @pl.when(k == pl.num_programs(2) - 1)
    def _():
        o_ref[...] = acc_ref[...].astype(o_ref.dtype)


def _linear_nobias_kernel(x_ref, w_ref, o_ref, acc_ref):
    k = pl.program_id(2)

    @pl.when(k == 0)
    def _():
        acc_ref[...] = jnp.zeros_like(acc_ref)

    acc_ref[...] += jnp.dot(x_ref[...], w_ref[...],
                            preferred_element_type=jnp.float32)

    @pl.when(k == pl.num_programs(2) - 1)
    def _():
        o_ref[...] = acc_ref[...].astype(o_ref.dtype)


class QLinearLayer:
    """Pallas-TPU equivalent of quamba QLinearLayer.forward (is_quant_mode=False).

    Weight-side prep (transpose, padding, dtype cast) runs once at
    construction; the per-call path only reshapes/pads the activations.
    """

    def __init__(self, weight, bias=None, *, compute_dtype=jnp.bfloat16):
        out_features, in_features = weight.shape
        self.in_features = int(in_features)
        self.out_features = int(out_features)
        self.compute_dtype = compute_dtype
        self.has_bias = bias is not None

        n, k = self.out_features, self.in_features

        # Weight-owned tile dims (fixed at prep time). Prefer 256-multiples
        # (full v6e/v7x MXU tiles) when the dim allows it, 128 otherwise.
        tk_unit = 256 if k >= 256 else 128
        tn_unit = 256 if n >= 256 else 128
        tk = _pick_tile(k, _TK_MAX, tk_unit)
        tn = _pick_tile(n, _TN_MAX, tn_unit)

        # Megacore (v7x, 2 TCs): guarantee >=2 blocks along the parallel N
        # axis so both cores get work even when M fits in one tile.
        if _cdiv(_round_up(n, tn), tn) == 1 and n > 256:
            tn = _round_up(_cdiv(n, 2), 256)

        # Keep the worst-case (tm = _TM_MAX) footprint under the VMEM budget.
        in_isz = jnp.dtype(compute_dtype).itemsize
        while (_vmem_bytes(_TM_MAX, tn, tk, in_isz, 4, self.has_bias)
               > _VMEM_BUDGET and tk > 256):
            tk = max(256, _round_up(tk // 2, 128))
        while (_vmem_bytes(_TM_MAX, tn, tk, in_isz, 4, self.has_bias)
               > _VMEM_BUDGET and tn > 256):
            tn = max(256, _round_up(tn // 2, 128))

        self.tk, self.tn = int(tk), int(tn)
        self.k_pad = _round_up(k, self.tk)
        self.n_pad = _round_up(n, self.tn)

        # One-time weight prep: (N, K) -> (K, N), zero-pad, cast. Zero padding
        # along K is exact for the matmul; padded N columns are sliced off.
        w_t = jnp.asarray(weight).T.astype(compute_dtype)
        if (self.k_pad, self.n_pad) != (k, n):
            w_t = jnp.pad(w_t, ((0, self.k_pad - k), (0, self.n_pad - n)))
        self.w_prepped = w_t

        if bias is not None:
            b = jnp.asarray(bias).astype(jnp.float32).reshape(1, n)
            if self.n_pad != n:
                b = jnp.pad(b, ((0, 0), (0, self.n_pad - n)))
            self.b_prepped = b
        else:
            self.b_prepped = None

    def __call__(self, x):
        return self.forward(x)

    def forward(self, x):
        assert x.shape[-1] == self.in_features
        lead_shape = x.shape[:-1]
        m = int(math.prod(lead_shape)) if lead_shape else 1
        out_dtype = x.dtype

        x2d = x.reshape(m, self.in_features).astype(self.compute_dtype)

        tm = _pick_tile(m, _TM_MAX, 8)
        m_pad = _round_up(m, tm)
        if (m_pad, self.k_pad) != (m, self.in_features):
            x2d = jnp.pad(
                x2d, ((0, m_pad - m), (0, self.k_pad - self.in_features)))

        tn, tk = self.tn, self.tk
        grid = (m_pad // tm, self.n_pad // tn, self.k_pad // tk)

        in_isz = jnp.dtype(self.compute_dtype).itemsize
        out_isz = jnp.dtype(out_dtype).itemsize
        footprint = _vmem_bytes(tm, tn, tk, in_isz, out_isz, self.has_bias)
        vmem_limit = int(min(48 * 1024 * 1024,
                             max(32 * 1024 * 1024,
                                 footprint + 8 * 1024 * 1024)))

        x_spec = pl.BlockSpec((tm, tk), lambda i, j, kk: (i, kk))
        w_spec = pl.BlockSpec((tk, tn), lambda i, j, kk: (kk, j))
        o_spec = pl.BlockSpec((tm, tn), lambda i, j, kk: (i, j))
        scratch = [pltpu.VMEM((tm, tn), jnp.float32)]
        cparams = pltpu.CompilerParams(
            dimension_semantics=("parallel", "parallel", "arbitrary"),
            vmem_limit_bytes=vmem_limit,
        )

        if self.has_bias:
            b_spec = pl.BlockSpec((1, tn), lambda i, j, kk: (0, j))
            out2d = pl.pallas_call(
                _linear_bias_kernel,
                out_shape=jax.ShapeDtypeStruct((m_pad, self.n_pad), out_dtype),
                grid_spec=pltpu.PrefetchScalarGridSpec(
                    num_scalar_prefetch=0,
                    grid=grid,
                    in_specs=[x_spec, w_spec, b_spec],
                    out_specs=o_spec,
                    scratch_shapes=scratch,
                ),
                compiler_params=cparams,
            )(x2d, self.w_prepped, self.b_prepped)
        else:
            out2d = pl.pallas_call(
                _linear_nobias_kernel,
                out_shape=jax.ShapeDtypeStruct((m_pad, self.n_pad), out_dtype),
                grid_spec=pltpu.PrefetchScalarGridSpec(
                    num_scalar_prefetch=0,
                    grid=grid,
                    in_specs=[x_spec, w_spec],
                    out_specs=o_spec,
                    scratch_shapes=scratch,
                ),
                compiler_params=cparams,
            )(x2d, self.w_prepped)

        out2d = out2d[:m, :self.out_features]
        return out2d.reshape(*lead_shape, self.out_features)


def qlinear_forward(x, weight, bias=None, *, compute_dtype=jnp.bfloat16):
    """One-shot convenience wrapper. For repeated calls construct QLinearLayer
    once so the weight prep (transpose + pad + cast) is not redone per call."""
    return QLinearLayer(weight, bias, compute_dtype=compute_dtype)(x)


# TODO(synk): quant-mode path (fake_quant_weight via dynamic per-tensor absmax,
# gated behind configure()) is not implemented; only the default non-quant
# forward is provided. For a future int8 weight path: keep int8 in HBM
# (halves weight HBM traffic), use the int8 MXU on v5e/v6e, and dequantize to
# bf16 (or use fp8) in the kernel prologue on v7x (no integer MXU there).


if __name__ == "__main__":
    key = jax.random.PRNGKey(0)
    k_x, k_w, k_b = jax.random.split(key, 3)

    batch, seq = 2, 8
    in_features, out_features = 32, 64

    x = jax.random.normal(k_x, (batch, seq, in_features), dtype=jnp.float32)
    weight = jax.random.normal(
        k_w, (out_features, in_features), dtype=jnp.float32) * 0.05
    bias = jax.random.normal(k_b, (out_features,), dtype=jnp.float32) * 0.1

    ref = jnp.einsum("bsk,nk->bsn", x, weight) + bias
    ref_nb = jnp.einsum("bsk,nk->bsn", x, weight)

    # Default path: bf16 operands on the MXU, f32 accumulation.
    layer = QLinearLayer(weight, bias)
    out = jax.block_until_ready(layer(x))
    assert out.shape == (batch, seq, out_features)
    assert out.dtype == x.dtype
    assert jnp.allclose(out, ref, atol=2e-2, rtol=2e-2)

    # f32 compute path: tight match against the reference.
    layer_f32 = QLinearLayer(weight, bias, compute_dtype=jnp.float32)
    out_f32 = jax.block_until_ready(layer_f32(x))
    assert jnp.allclose(out_f32, ref, atol=1e-4, rtol=1e-4)

    # No-bias path.
    out_nb = jax.block_until_ready(
        QLinearLayer(weight, None, compute_dtype=jnp.float32)(x))
    assert jnp.allclose(out_nb, ref_nb, atol=1e-4, rtol=1e-4)

    print("KERNEL_OK")
</pallas_src>

<mosaic_0001>
module attributes {stable_mosaic.version = 11 : i64} {
  func.func @_linear_bias_kernel(%arg0: i32, %arg1: i32, %arg2: i32, %arg3: memref<16x128xbf16, #tpu.memory_space<vmem>>, %arg4: memref<128x128xbf16, #tpu.memory_space<vmem>>, %arg5: memref<1x128xf32, #tpu.memory_space<vmem>>, %arg6: memref<16x128xf32, #tpu.memory_space<vmem>>, %arg7: memref<16x128xf32, #tpu.memory_space<vmem>>) attributes {dimension_semantics = [#tpu.dimension_semantics<parallel>, #tpu.dimension_semantics<parallel>, #tpu.dimension_semantics<arbitrary>], iteration_bounds = array<i64: 1, 1, 1>, scalar_prefetch = 0 : i64, scratch_operands = 1 : i64, tpu.core_type = #tpu.core_type<tc>, window_params = [{transform_indices = @transform_0, window_bounds = array<i64: 16, 128>}, {transform_indices = @transform_1, window_bounds = array<i64: 128, 128>}, {transform_indices = @transform_2, window_bounds = array<i64: 1, 128>}, {transform_indices = @transform_3, window_bounds = array<i64: 16, 128>}]} {
    %c0_i32 = arith.constant 0 : i32
    %0 = arith.cmpi eq, %arg2, %c0_i32 : i32
    %1 = arith.extui %0 : i1 to i32
    %c0_i32_0 = arith.constant 0 : i32
    %2 = arith.cmpi ne, %1, %c0_i32_0 : i32
    scf.if %2 {
      %c0_10 = arith.constant 0 : index
      %c0_11 = arith.constant 0 : index
      %12 = vector.load %arg5[%c0_10, %c0_11] : memref<1x128xf32, #tpu.memory_space<vmem>>, vector<1x128xf32>
      %13 = vector.shape_cast %12 : vector<1x128xf32> to vector<1x128xf32>
      %14 = vector.broadcast %13 : vector<1x128xf32> to vector<16x128xf32>
      %c0_12 = arith.constant 0 : index
      %c0_13 = arith.constant 0 : index
      %15 = vector.load %arg7[%c0_12, %c0_13] : memref<16x128xf32, #tpu.memory_space<vmem>>, vector<16x128xf32>
      tpu.vector_store %arg7[%c0_12, %c0_13], %14 {strides = array<i32>} : memref<16x128xf32, #tpu.memory_space<vmem>>, vector<16x128xf32>,
    } else {
    }
    %c0 = arith.constant 0 : index
    %c0_1 = arith.constant 0 : index
    %3 = vector.load %arg7[%c0, %c0_1] : memref<16x128xf32, #tpu.memory_space<vmem>>, vector<16x128xf32>
    %c0_2 = arith.constant 0 : index
    %c0_3 = arith.constant 0 : index
    %4 = vector.load %arg3[%c0_2, %c0_3] : memref<16x128xbf16, #tpu.memory_space<vmem>>, vector<16x128xbf16>
    %c0_4 = arith.constant 0 : index
    %c0_5 = arith.constant 0 : index
    %5 = vector.load %arg4[%c0_4, %c0_5] : memref<128x128xbf16, #tpu.memory_space<vmem>>, vector<128x128xbf16>
    %cst = arith.constant dense<0.000000e+00> : vector<16x128xf32>
    %6 = tpu.matmul %4, %5, %cst {dimension_numbers = #tpu.dot_dimension_numbers<[1], [0], [0], [1], [0, 0, 1, 1], [], []>} : vector<16x128xbf16>, vector<128x128xbf16>, vector<16x128xf32> -> vector<16x128xf32>
    %7 = arith.addf %3, %6 : vector<16x128xf32>
    %c0_6 = arith.constant 0 : index
    %c0_7 = arith.constant 0 : index
    %8 = vector.load %arg7[%c0_6, %c0_7] : memref<16x128xf32, #tpu.memory_space<vmem>>, vector<16x128xf32>
    tpu.vector_store %arg7[%c0_6, %c0_7], %7 {strides = array<i32>} : memref<16x128xf32, #tpu.memory_space<vmem>>, vector<16x128xf32>,
    %c0_i32_8 = arith.constant 0 : i32
    %9 = arith.cmpi eq, %arg2, %c0_i32_8 : i32
    %10 = arith.extui %9 : i1 to i32
    %c0_i32_9 = arith.constant 0 : i32
    %11 = arith.cmpi ne, %10, %c0_i32_9 : i32
    scf.if %11 {
      %c0_10 = arith.constant 0 : index
      %c0_11 = arith.constant 0 : index
      %12 = vector.load %arg7[%c0_10, %c0_11] : memref<16x128xf32, #tpu.memory_space<vmem>>, vector<16x128xf32>
      %c0_12 = arith.constant 0 : index
      %c0_13 = arith.constant 0 : index
      %13 = vector.load %arg6[%c0_12, %c0_13] : memref<16x128xf32, #tpu.memory_space<vmem>>, vector<16x128xf32>
      tpu.vector_store %arg6[%c0_12, %c0_13], %12 {strides = array<i32>} : memref<16x128xf32, #tpu.memory_space<vmem>>, vector<16x128xf32>,
    } else {
    }
    return
  }
  func.func @transform_0(%arg0: i32, %arg1: i32, %arg2: i32) -> (i32, i32) {
    %c0_i32 = arith.constant 0 : i32
    return %arg0, %arg2 : i32, i32
  }
  func.func @transform_1(%arg0: i32, %arg1: i32, %arg2: i32) -> (i32, i32) {
    %c0_i32 = arith.constant 0 : i32
    return %arg2, %arg1 : i32, i32
  }
  func.func @transform_2(%arg0: i32, %arg1: i32, %arg2: i32) -> (i32, i32) {
    %c0_i32 = arith.constant 0 : i32
    %c0_i32_0 = arith.constant 0 : i32
    return %c0_i32, %arg1 : i32, i32
  }
  func.func @transform_3(%arg0: i32, %arg1: i32, %arg2: i32) -> (i32, i32) {
    %c0_i32 = arith.constant 0 : i32
    return %arg0, %arg1 : i32, i32
  }
}

</mosaic_0001>

<bundles_post_ra>
// kernel: tpu_custom_call.1
= control target key start
LH: loop header
LB: loop body
LE: loop exit
PB: predicated region body
PF: predicated region fallthrough
CT: control target
= control target key end

     0   :  { %8 = vsyncpa [#allocation4], 0  ;;  %s365_s0 = inlined_call_operand.hbm [shape: bf16[16,128], index: 0, kind: input, shape index: {}]   ;;  %s366_s1 = inlined_call_operand.hbm [shape: bf16[128,128], index: 1, kind: input, shape index: {}]   ;;  %s367_s2 = inlined_call_operand.vmem [shape: f32[1,128], index: 2, kind: input, shape index: {}]   ;;  %s368_s3 = inlined_call_operand.hbm [shape: f32[16,128], index: 3, kind: output, shape index: {}]  }
   0x1   :  { %9 = vsyncpa [#allocation7], 0 }
   0x2   :  { %10 = vsyncpa [#allocation5], 0  ;;  %s324_s12 = smov [#allocation3]  }
   0x3   :  { %s16_s13 = sshll.u32 %s324_s12, 4  ;;  %s17_s13 = int_to_ptr.vmem [resolvable:$true] %s16_s13 }
   0x4   :  { %s266_s14 = scalar_lea.vmem %s17_s13, 128  ;;  %p271_p1 = scmp.lt.s32.totalorder %s17_s13, %s17_s13 }
   0x5   :  { %p267_p0 = scmp.ne.s32.totalorder %s17_s13, %s266_s14  ;;  %p272_p2 = scmp.lt.s32.totalorder %s266_s14, %s266_s14 }
   0x7   :  { %p273_p3 = por %p272_p2, %p271_p1 }
   0x9   :  { %p274_p4 = pnand %p273_p3, %p267_p0 }
   0xb   :  { %277 = shalt.err (!%p274_p4)
}
   0xc   :  { %s325_s15 = smov 64   ;;  %s326_s16 = smov 4  }
   0xd   :  { %22 = dma.hbm_to_vmem [thread:$0]  %s365_s0, 128, %s17_s13, [#allocation4], %s325_s15, %s325_s15, %s326_s16  }
   0xe   :  { %s327_s19 = smov [#allocation6]  }
   0xf   :  { %s28_s20 = sshll.u32 %s327_s19, 4  ;;  %s29_s20 = int_to_ptr.vmem [resolvable:$true] %s28_s20 }
  0x10   :  { %s286_s21 = scalar_lea.vmem %s29_s20, 1024  ;;  %p291_p6 = scmp.lt.s32.totalorder %s29_s20, %s29_s20 }
  0x11   :  { %p287_p5 = scmp.ne.s32.totalorder %s29_s20, %s286_s21  ;;  %p292_p7 = scmp.lt.s32.totalorder %s286_s21, %s286_s21 }
  0x13   :  { %p293_p8 = por %p292_p7, %p291_p6 }
  0x15   :  { %p294_p9 = pnand %p293_p8, %p287_p5 }
  0x17   :  { %297 = shalt.err (!%p294_p9)
}
  0x18   :  { %34 = dma.hbm_to_vmem [thread:$0]  %s366_s1, 1024, %s29_s20, [#allocation7], %s325_s15, %s325_s15, %s326_s16  }
  0x19   :  { %318 = dma.done.wait [#allocation4], 128  }
  0x1a   :  { %319 = vsyncadd [#allocation4], 4294967168 }
  0x1b   :  { %320 = dma.done.wait [#allocation7], 1024  }
  0x1c   :  { %321 = vsyncadd [#allocation7], 4294966272  ;;  %v328_v0 = vmov 0.0   ;;  %vm329_vm0 = vmmov 0   ;;  %v249_v1 = vld [vmem:[#allocation6 + $0x38] sm:$0xff]   ;;  %v250_v2 = vld [vmem:[#allocation6 + $0x30] sm:$0xff]  }
  0x1d   :  { %220 = vmatprep.subr.bf16.mxu0 %v328_v0  ;;  %236 = vmatprep.mubr.msk.bf16.mxu0 %vm329_vm0, %v328_v0  ;;  %v251_v3 = vld [vmem:[#allocation6 + $0x28] sm:$0xff]   ;;  %v252_v4 = vld [vmem:[#allocation6 + $0x20] sm:$0xff]   ;;  %v253_v5 = vld [vmem:[#allocation6 + $0x18] sm:$0xff]   ;;  %s330_s24 = smov [#allocation8]  }
  0x1e   :  { %221 = vmatpush3.bf16.msra.mxu0 %v249_v1  ;;  %v254_v6 = vld [vmem:[#allocation6 + $0x10] sm:$0xff]   ;;  %v255_v7 = vld [vmem:[#allocation6 + $0x8] sm:$0xff]   ;;  %v256_v8 = vld [vmem:[#allocation6] sm:$0xff]   ;;  %s188_s25 = sshll.u32 %s330_s24, 4  ;;  %s189_s25 = int_to_ptr.vmem [resolvable:$true] %s188_s25 }
  0x1f   :  { %222 = vmatprep.subr.bf16.mxu0 %v328_v0  ;;  %v257_v9 = vld [vmem:[#allocation3] sm:$0xff]   ;;  %s298_s26 = scalar_lea.vmem %s189_s25, 256  ;;  %p303_p11 = scmp.lt.s32.totalorder %s189_s25, %s189_s25 }
  0x20   :  { %v201_v10 = vld [vmem:[%s367_s2] ss:$0 sm:$0xff]  ;;  %p299_p10 = scmp.ne.s32.totalorder %s189_s25, %s298_s26  ;;  %p304_p12 = scmp.lt.s32.totalorder %s298_s26, %s298_s26 }
  0x22   :  { %223 = vmatpush3.bf16.msra.mxu0 %v250_v2  ;;  %p305_p13 = por %p304_p12, %p303_p11 }
  0x23   :  { %224 = vmatprep.subr.bf16.mxu0 %v328_v0 }
  0x24   :  { %p306_p0 = pnand %p305_p13, %p299_p10 }
  0x26   :  { %225 = vmatpush3.bf16.msra.mxu0 %v251_v3 }
  0x27   :  { %226 = vmatprep.subr.bf16.mxu0 %v328_v0 }
  0x2a   :  { %227 = vmatpush3.bf16.msra.mxu0 %v252_v4 }
  0x2b   :  { %228 = vmatprep.subr.bf16.mxu0 %v328_v0 }
  0x2e   :  { %229 = vmatpush3.bf16.msra.mxu0 %v253_v5 }
  0x2f   :  { %230 = vmatprep.subr.bf16.mxu0 %v328_v0 }
  0x32   :  { %231 = vmatpush3.bf16.msra.mxu0 %v254_v6 }
  0x33   :  { %232 = vmatprep.subr.bf16.mxu0 %v328_v0 }
  0x36   :  { %233 = vmatpush3.bf16.msra.mxu0 %v255_v7 }
  0x37   :  { %234 = vmatprep.subr.bf16.mxu0 %v328_v0 }
  0x3a   :  { %235 = vmatpush3.bf16.msra.mxu0 %v256_v8 }
  0x3d   :  { %237 = vmatmul.mubr.bf16.vlgmr.msra.gmra.mxu0 %v257_v9 }
  0xfd   :  { %v165_v11 = vpop.f32.mrf.mxu0 }
  0xfe   :  { %v172_v12 = vadd.f32 %v201_v10, %v165_v11 }
  0xff   :  { %v238_v13 = vpop.f32.mrf.mxu0 }
 0x100   :  { %181 = vst [vmem:[#allocation8] sm:$0xff] %v172_v12 }
 0x101   :  { %v168_v14 = vpop.f32.mrf.mxu0 }
 0x102   :  { %v173_v15 = vadd.f32 %v201_v10, %v168_v14 }
 0x103   :  { %v239_v16 = vpop.f32.mrf.mxu0 }
 0x104   :  { %182 = vst [vmem:[#allocation8 + $0x8] sm:$0xff] %v173_v15 }
 0x105   :  { %309 = shalt.err (!%p306_p0)
}
 0x106   :  { %s331_s27 = smov 128   ;;  %s332_s2 = smov 8  }
 0x107   :  { %194 = dma.vmem_to_hbm [thread:$0]  %s189_s25, 256, %s368_s3, [#allocation5], %s331_s27, %s331_s27, %s332_s2  }
 0x108   :  { %322 = dma.done.wait [#allocation5], 256  }
 0x109   :  { %323 = vsyncadd [#allocation5], 4294967040 }
 0x10a   :  { %198 = vsyncpa [#allocation4], 1 }
 0x10b   :  { %199 = vsyncpa [#allocation7], 1 }
 0x10c   :  { %200 = vsyncpa [#allocation5], 1 }

</bundles_post_ra>
